<compile_context>
chip_gen: v6e
topology: v6e:2x2x1
jax: 0.10.0
libtpu: 0.0.40
codegen_flags: <defaults>
</compile_context>

<pallas_src>
import functools

import jax
import jax.numpy as jnp
from jax import lax
from jax.experimental import pallas as pl
from jax.experimental.pallas import tpu as pltpu


def _focal_loss_kernel(count_ref, x_ref, t_ref, alpha_ref, out_ref, *, gamma):
    """One (batch row, point tile) step.

    x_ref:     (1, C, TP)  logits block (original dtype), classes on sublanes
    t_ref:     (1, 1, TP)  int32 targets
    alpha_ref: (C, 1)      f32 per-class weights (ones when alpha is None)
    out_ref:   (1, 1, 128) f32 partial-sum slab (lane 0 carries the value)
    count_ref: (1,)        int32 valid point count P (scalar prefetch, SMEM)
    """
    pt_i = pl.program_id(1)

    x = x_ref[0].astype(jnp.float32)      # (C, TP) — cast in-kernel, HBM stays bf16/f32
    tgt = t_ref[0]                        # (1, TP) int32
    alpha = alpha_ref[...]                # (C, 1)  f32

    c, tp = x.shape

    # log_softmax over the class (sublane) axis.
    m = jnp.max(x, axis=0, keepdims=True)                       # (1, TP)
    shifted = x - m
    lse = jnp.log(jnp.sum(jnp.exp(shifted), axis=0, keepdims=True))

    # One-hot gathers as boolean selects (no float one-hot multiplies).
    sel = lax.broadcasted_iota(jnp.int32, (c, tp), 0) == tgt    # (C, TP)
    logpt = jnp.sum(jnp.where(sel, shifted, 0.0), axis=0, keepdims=True) - lse
    pt = jnp.exp(logpt)                                         # (1, TP)
    at = jnp.sum(jnp.where(sel, alpha, 0.0), axis=0, keepdims=True)
    logpt = logpt * at

    # (1 - pt)^gamma modulator (gamma is a static Python float).
    one_minus_pt = jnp.maximum(1.0 - pt, 0.0)
    if gamma == 0.0:
        mod = jnp.ones_like(pt)
    elif float(gamma).is_integer():
        mod = one_minus_pt ** int(gamma)           # lax.integer_pow -> VPU muls
    else:
        mod = jnp.exp(gamma * jnp.log(jnp.maximum(one_minus_pt, 1e-30)))

    loss = -mod * logpt                                         # (1, TP)

    # Mask lanes beyond the valid point count (partial last tile has garbage).
    pcol = pt_i * tp + lax.broadcasted_iota(jnp.int32, (1, tp), 1)
    loss = jnp.where(pcol < count_ref[0], loss, 0.0)

    partial = jnp.sum(loss)

    # Lane-dense 128-wide store of this tile's partial sum.
    lane = lax.broadcasted_iota(jnp.int32, (1, 1, 128), 2)
    out_ref[...] = jnp.where(lane == 0, partial, 0.0)


def _pick_tile_p(p, c, itemsize, b):
    """Point-axis tile: a multiple of 128 (or the full extent when small)."""
    if p <= 128:
        return p  # full-extent lane block is legal even if p % 128 != 0
    # Per-step VMEM ~ double-buffered input block + ~8 f32 temps of (C, tile);
    # keep it a few MiB so it fits every generation's default scoped VMEM
    # (v5e 16 MiB, v6e/v7x 32 MiB) with headroom.
    bytes_per_col = c * (2 * itemsize + 8 * 4)
    tile = (4 * 1024 * 1024) // max(bytes_per_col, 1)
    tile = max(128, min((tile // 128) * 128, 4096))
    # Give v7x's two TensorCores at least a few parallel grid steps.
    while tile > 128 and b * (-(-p // tile)) < 4:
        tile = max(128, ((tile // 2) // 128) * 128)
    if tile >= p:
        return p  # one full-extent block per batch row
    return tile


def focal_loss_forward(logits, target, *, gamma=0.0, alpha=None,
                       size_average=True, tile_p=None):
    # ---- bring input to [B, C, P] (copy-free for the ndim>2 path) ----
    if logits.ndim > 2:
        b, c = logits.shape[0], logits.shape[1]
        x3 = logits.reshape(b, c, -1)                     # free reshape, keeps dtype
        t3 = target.reshape(b, 1, -1).astype(jnp.int32)
    else:
        # Classification path [M, C]: one small transpose so classes sit on
        # sublanes / samples on lanes (segmentation path above needs no copy).
        m_rows, c = logits.shape
        x3 = jnp.transpose(logits)[None]                  # [1, C, M]
        t3 = target.reshape(1, 1, -1).astype(jnp.int32)
        b = 1
    p = x3.shape[2]

    # ---- per-class alpha column (ones == "alpha is None") ----
    if alpha is None:
        alpha_vec = jnp.ones((c,), jnp.float32)
    elif isinstance(alpha, (float, int)):
        alpha_vec = jnp.array([alpha, 1.0 - alpha], jnp.float32)
    else:
        alpha_vec = jnp.asarray(alpha, jnp.float32).reshape(-1)
    if alpha_vec.shape[0] < c:
        raise ValueError(
            f"alpha has {alpha_vec.shape[0]} entries but input has {c} classes")
    a_col = alpha_vec[:c].reshape(c, 1)

    itemsize = jnp.dtype(x3.dtype).itemsize
    if tile_p is None:
        tile_p = _pick_tile_p(p, c, itemsize, b)
    num_p_tiles = -(-p // tile_p)

    count = jnp.array([p], jnp.int32)   # scalar prefetch: valid points per row

    kernel = functools.partial(_focal_loss_kernel, gamma=float(gamma))
    partials = pl.pallas_call(
        kernel,
        out_shape=jax.ShapeDtypeStruct((b, 1, num_p_tiles * 128), jnp.float32),
        grid_spec=pltpu.PrefetchScalarGridSpec(
            num_scalar_prefetch=1,
            grid=(b, num_p_tiles),
            in_specs=[
                pl.BlockSpec((1, c, tile_p), lambda bi, pi, cnt: (bi, 0, pi)),
                pl.BlockSpec((1, 1, tile_p), lambda bi, pi, cnt: (bi, 0, pi)),
                pl.BlockSpec((c, 1), lambda bi, pi, cnt: (0, 0)),
            ],
            out_specs=pl.BlockSpec((1, 1, 128), lambda bi, pi, cnt: (bi, 0, pi)),
        ),
        compiler_params=pltpu.CompilerParams(
            dimension_semantics=("parallel", "parallel")),
    )(count, x3, t3, a_col)

    # Tiny cross-tile reduction (kept in JAX so the grid stays fully parallel).
    total = jnp.sum(partials)
    if size_average:
        return total / (b * p)
    return total


# ---------------- plain-JAX reference for verification ----------------------

def reference_focal_loss(logits, target, *, gamma=0.0, alpha=None,
                         size_average=True):
    if logits.ndim > 2:
        b, c = logits.shape[0], logits.shape[1]
        x = logits.reshape(b, c, -1)
        x = jnp.transpose(x, (0, 2, 1)).reshape(-1, c)
    else:
        x = logits
    t = target.reshape(-1)
    logp = jax.nn.log_softmax(x.astype(jnp.float32), axis=-1)
    logpt = jnp.take_along_axis(logp, t[:, None], axis=1)[:, 0]
    pt = jnp.exp(logpt)
    if alpha is not None:
        if isinstance(alpha, (float, int)):
            avec = jnp.array([alpha, 1.0 - alpha], jnp.float32)
        else:
            avec = jnp.asarray(alpha, jnp.float32)
        logpt = logpt * avec[t]
    loss = -((1.0 - pt) ** gamma) * logpt
    return loss.mean() if size_average else loss.sum()


if __name__ == "__main__":
    # input [B, C, H, W]: 4 classes, P = 8*25 = 200 points per batch row
    # -> two 128-wide point tiles per row (last one partial: exercises masking).
    B, C, H, W = 2, 4, 8, 25
    key = jax.random.PRNGKey(0)
    k1, k2 = jax.random.split(key)
    logits = jax.random.normal(k1, (B, C, H, W), jnp.float32)
    target = jax.random.randint(k2, (B, H, W), 0, C, jnp.int32)

    configs = [
        dict(gamma=2.0, alpha=[0.1, 0.2, 0.3, 0.4], size_average=True),
        dict(gamma=0.0, alpha=None, size_average=False),
        dict(gamma=1.5, alpha=None, size_average=True),
    ]
    for cfg in configs:
        out = jax.block_until_ready(focal_loss_forward(logits, target, **cfg))
        ref = reference_focal_loss(logits, target, **cfg)
        assert jnp.allclose(out, ref, rtol=1e-4, atol=1e-4), (
            cfg, float(out), float(ref))

    # bf16 logits stay bf16 in HBM (half the read bytes); math is f32 in-kernel.
    logits_bf16 = logits.astype(jnp.bfloat16)
    out = jax.block_until_ready(
        focal_loss_forward(logits_bf16, target, gamma=2.0, alpha=None))
    ref = reference_focal_loss(logits_bf16, target, gamma=2.0, alpha=None)
    assert jnp.allclose(out, ref, rtol=2e-3, atol=2e-3), (float(out), float(ref))

    # 2-D classification path (scalar alpha, binary classes).
    k3, k4 = jax.random.split(k2)
    logits2 = jax.random.normal(k3, (64, 2), jnp.float32)
    target2 = jax.random.randint(k4, (64,), 0, 2, jnp.int32)
    out = jax.block_until_ready(
        focal_loss_forward(logits2, target2, gamma=2.0, alpha=0.25))
    ref = reference_focal_loss(logits2, target2, gamma=2.0, alpha=0.25)
    assert jnp.allclose(out, ref, rtol=1e-4, atol=1e-4), (float(out), float(ref))

    print("KERNEL_OK")
</pallas_src>

<mosaic_0001>
module attributes {stable_mosaic.version = 11 : i64} {
  func.func @_focal_loss_kernel(%arg0: i32, %arg1: i32, %arg2: memref<1xi32, #tpu.memory_space<smem>>, %arg3: memref<1x4x128xf32, #tpu.memory_space<vmem>>, %arg4: memref<1x1x128xi32, #tpu.memory_space<vmem>>, %arg5: memref<4x1xf32, #tpu.memory_space<vmem>>, %arg6: memref<1x1x128xf32, #tpu.memory_space<vmem>>) attributes {dimension_semantics = [#tpu.dimension_semantics<parallel>, #tpu.dimension_semantics<parallel>], iteration_bounds = array<i64: 2, 2>, scalar_prefetch = 1 : i64, scratch_operands = 0 : i64, tpu.core_type = #tpu.core_type<tc>, window_params = [{transform_indices = @transform_0, window_bounds = array<i64: 1, 4, 128>}, {transform_indices = @transform_1, window_bounds = array<i64: 1, 1, 128>}, {pipeline_mode = #tpu.pipeline_mode<synchronous>, transform_indices = @transform_2, window_bounds = array<i64: 4, 1>}, {transform_indices = @transform_3, window_bounds = array<i64: 1, 1, 128>}]} {
    %c0 = arith.constant 0 : index
    %c0_0 = arith.constant 0 : index
    %c0_1 = arith.constant 0 : index
    %0 = vector.load %arg3[%c0, %c0_0, %c0_1] : memref<1x4x128xf32, #tpu.memory_space<vmem>>, vector<1x4x128xf32>
    %1 = vector.shape_cast %0 : vector<1x4x128xf32> to vector<4x128xf32>
    %c0_2 = arith.constant 0 : index
    %c0_3 = arith.constant 0 : index
    %c0_4 = arith.constant 0 : index
    %2 = vector.load %arg4[%c0_2, %c0_3, %c0_4] : memref<1x1x128xi32, #tpu.memory_space<vmem>>, vector<1x1x128xi32>
    %3 = vector.shape_cast %2 : vector<1x1x128xi32> to vector<1x128xi32>
    %c0_5 = arith.constant 0 : index
    %c0_6 = arith.constant 0 : index
    %4 = vector.load %arg5[%c0_5, %c0_6] : memref<4x1xf32, #tpu.memory_space<vmem>>, vector<4x1xf32>
    %cst = arith.constant dense<0xFF800000> : vector<128xf32>
    %5 = vector.multi_reduction <maximumf>, %1, %cst [0] : vector<4x128xf32> to vector<128xf32>
    %6 = vector.shape_cast %5 : vector<128xf32> to vector<1x128xf32>
    %7 = vector.broadcast %6 : vector<1x128xf32> to vector<4x128xf32>
    %8 = arith.subf %1, %7 : vector<4x128xf32>
    %9 = math.exp %8 : vector<4x128xf32>
    %cst_7 = arith.constant dense<0.000000e+00> : vector<128xf32>
    %10 = vector.multi_reduction <add>, %9, %cst_7 [0] : vector<4x128xf32> to vector<128xf32>
    %11 = vector.shape_cast %10 : vector<128xf32> to vector<1x128xf32>
    %12 = math.log %11 : vector<1x128xf32>
    %13 = tpu.iota {dimensions = array<i32: 0>} : vector<4x128xi32>
    %14 = vector.broadcast %3 : vector<1x128xi32> to vector<4x128xi32>
    %15 = arith.cmpi eq, %13, %14 : vector<4x128xi32>
    %cst_8 = arith.constant 0.000000e+00 : f32
    %16 = vector.broadcast %cst_8 : f32 to vector<4x128xf32>
    %17 = arith.select %15, %8, %16 : vector<4x128xi1>, vector<4x128xf32>
    %cst_9 = arith.constant dense<0.000000e+00> : vector<128xf32>
    %18 = vector.multi_reduction <add>, %17, %cst_9 [0] : vector<4x128xf32> to vector<128xf32>
    %19 = vector.shape_cast %18 : vector<128xf32> to vector<1x128xf32>
    %20 = arith.subf %19, %12 : vector<1x128xf32>
    %21 = math.exp %20 : vector<1x128xf32>
    %cst_10 = arith.constant 0.000000e+00 : f32
    %22 = vector.shape_cast %4 : vector<4x1xf32> to vector<4x1xf32>
    %23 = vector.broadcast %22 : vector<4x1xf32> to vector<4x128xf32>
    %24 = vector.broadcast %cst_10 : f32 to vector<4x128xf32>
    %25 = arith.select %15, %23, %24 : vector<4x128xi1>, vector<4x128xf32>
    %cst_11 = arith.constant dense<0.000000e+00> : vector<128xf32>
    %26 = vector.multi_reduction <add>, %25, %cst_11 [0] : vector<4x128xf32> to vector<128xf32>
    %27 = vector.shape_cast %26 : vector<128xf32> to vector<1x128xf32>
    %28 = arith.mulf %20, %27 : vector<1x128xf32>
    %cst_12 = arith.constant 1.000000e+00 : f32
    %29 = vector.broadcast %cst_12 : f32 to vector<1x128xf32>
    %30 = arith.subf %29, %21 : vector<1x128xf32>
    %cst_13 = arith.constant 0.000000e+00 : f32
    %31 = vector.broadcast %cst_13 : f32 to vector<1x128xf32>
    %32 = arith.maximumf %30, %31 : vector<1x128xf32>
    %33 = arith.mulf %32, %32 : vector<1x128xf32>
    %cst_14 = arith.constant 0.000000e+00 : f32
    %34 = vector.broadcast %cst_14 : f32 to vector<1x128xf32>
    %35 = arith.subf %34, %33 : vector<1x128xf32>
    %36 = arith.mulf %35, %28 : vector<1x128xf32>
    %c128_i32 = arith.constant 128 : i32
    %37 = arith.muli %arg1, %c128_i32 : i32
    %38 = tpu.iota {dimensions = array<i32: 1>} : vector<1x128xi32>
    %39 = vector.broadcast %37 : i32 to vector<1x128xi32>
    %40 = arith.addi %39, %38 : vector<1x128xi32>
    %c0_15 = arith.constant 0 : index
    %41 = memref.load %arg2[%c0_15] : memref<1xi32, #tpu.memory_space<smem>>
    %42 = vector.broadcast %41 : i32 to vector<1x128xi32>
    %43 = arith.cmpi slt, %40, %42 : vector<1x128xi32>
    %cst_16 = arith.constant 0.000000e+00 : f32
    %44 = vector.broadcast %cst_16 : f32 to vector<1x128xf32>
    %45 = arith.select %43, %36, %44 : vector<1x128xi1>, vector<1x128xf32>
    %46 = vector.shape_cast %45 : vector<1x128xf32> to vector<1x1x128xf32>
    %cst_17 = arith.constant dense<0.000000e+00> : vector<1xf32>
    %47 = vector.multi_reduction <add>, %46, %cst_17 [1, 2] : vector<1x1x128xf32> to vector<1xf32>
    %48 = vector.shape_cast %47 : vector<1xf32> to vector<1x1x1xf32>
    %49 = vector.extract %48[0, 0, 0] : f32 from vector<1x1x1xf32>
    %50 = tpu.iota {dimensions = array<i32: 2>} : vector<1x1x128xi32>
    %c0_i32 = arith.constant 0 : i32
    %51 = vector.broadcast %c0_i32 : i32 to vector<1x1x128xi32>
    %52 = arith.cmpi eq, %50, %51 : vector<1x1x128xi32>
    %cst_18 = arith.constant 0.000000e+00 : f32
    %53 = vector.broadcast %49 : f32 to vector<1x1x128xf32>
    %54 = vector.broadcast %cst_18 : f32 to vector<1x1x128xf32>
    %55 = arith.select %52, %53, %54 : vector<1x1x128xi1>, vector<1x1x128xf32>
    %c0_19 = arith.constant 0 : index
    %c0_20 = arith.constant 0 : index
    %c0_21 = arith.constant 0 : index
    %56 = vector.load %arg6[%c0_19, %c0_20, %c0_21] : memref<1x1x128xf32, #tpu.memory_space<vmem>>, vector<1x1x128xf32>
    tpu.vector_store %arg6[%c0_19, %c0_20, %c0_21], %55 {strides = array<i32>} : memref<1x1x128xf32, #tpu.memory_space<vmem>>, vector<1x1x128xf32>,
    return
  }
  func.func @transform_0(%arg0: i32, %arg1: i32, %arg2: memref<1xi32, #tpu.memory_space<smem>>) -> (i32, i32, i32) {
    %c0_i32 = arith.constant 0 : i32
    %c0_i32_0 = arith.constant 0 : i32
    return %arg0, %c0_i32, %arg1 : i32, i32, i32
  }
  func.func @transform_1(%arg0: i32, %arg1: i32, %arg2: memref<1xi32, #tpu.memory_space<smem>>) -> (i32, i32, i32) {
    %c0_i32 = arith.constant 0 : i32
    %c0_i32_0 = arith.constant 0 : i32
    return %arg0, %c0_i32, %arg1 : i32, i32, i32
  }
  func.func @transform_2(%arg0: i32, %arg1: i32, %arg2: memref<1xi32, #tpu.memory_space<smem>>) -> (i32, i32) {
    %c0_i32 = arith.constant 0 : i32
    %c0_i32_0 = arith.constant 0 : i32
    %c0_i32_1 = arith.constant 0 : i32
    return %c0_i32, %c0_i32_0 : i32, i32
  }
  func.func @transform_3(%arg0: i32, %arg1: i32, %arg2: memref<1xi32, #tpu.memory_space<smem>>) -> (i32, i32, i32) {
    %c0_i32 = arith.constant 0 : i32
    %c0_i32_0 = arith.constant 0 : i32
    return %arg0, %c0_i32, %arg1 : i32, i32, i32
  }
}

</mosaic_0001>

<bundles_post_ra>
// kernel: tpu_custom_call.1
= control target key start
LH: loop header
LB: loop body
LE: loop exit
PB: predicated region body
PF: predicated region fallthrough
CT: control target
= control target key end

     0   :  { %s869_s0 = inlined_call_operand.<no memory space> [shape: s32[1], index: 0, kind: input, shape index: {}]   ;;  %s870_s1 = inlined_call_operand.hbm [shape: f32[2,4,200], index: 1, kind: input, shape index: {}]   ;;  %s871_s2 = inlined_call_operand.vmem [shape: s32[2,1,200], index: 2, kind: input, shape index: {}]   ;;  %s872_s3 = inlined_call_operand.vmem [shape: f32[4,1], index: 3, kind: input, shape index: {}]   ;;  %s873_s4 = inlined_call_operand.hbm [shape: f32[2,1,256], index: 4, kind: output, shape index: {}]  }
   0x1   :  { %9 = sst [smem:[#allocation3]] %s869_s0 }
   0x2   :  { %10 = vsyncpa [#allocation5], 0 }
   0x3   :  { %12 = vsyncpa [#allocation5 + $0x1], 0 }
   0x4   :  { %13 = vsyncpa [#allocation6], 0 }
   0x5   :  { %15 = vsyncpa [#allocation6 + $0x1], 0  ;;  %s689_s17 = smov 0   ;;  %s691_s18 = smov 0  }
   0x6   :  { %s693_s19 = smov 0   ;;  %s695_s20 = smov 0  }
   0x7   :  { %s697_s21 = smov 0   ;;  %s699_s22 = smov 0  }
   0x8   :  { %s701_s23 = smov 0   ;;  %s703_s24 = smov 0  }
   0x9 LB: > { %s428_s0 = sadd.s32 4294967295, %s656_s24   ;;  %s429_s25 = sadd.s32 4294967294, %s656_s24   ;;  %s656_s24 = sphi %s703_s24, %s21_s24   ;;  %s652_s23 = sphi %s701_s23, %s889_s23   ;;  %s648_s22 = sphi %s699_s22, %s888_s22   ;;  %s644_s21 = sphi %s697_s21, %s887_s21   ;;  %s640_s20 = sphi %s695_s20, %s886_s20   ;;  %s636_s19 = sphi %s693_s19, %s885_s19   ;;  %s632_s18 = sphi %s691_s18, %s884_s18   ;;  %s628_s17 = sphi %s689_s17, %s883_s17  }
   0xa   : > { %s30_s26 = sadd.s32 1, %s648_s22  ;;  %s33_s27 = sadd.s32 1, %s652_s23 }
   0xb   : > { %p31_p0 = scmp.ge.s32.totalorder %s30_s26, 2  ;;  %s42_s28 = sadd.s32 1, %s636_s19 }
   0xc   : > { %p49_p1 = scmp.ne.s32.totalorder %s636_s19, %s632_s18  ;;  %p50_p2 = scmp.eq.s32.totalorder %s656_s24, 0 }
   0xd   : > { %s891_s26 = smov (%p31_p0, %s30_s26), 0  ;;  %s893_s27 = smov (!%p31_p0, %s33_s27), %s652_s23 }
   0xe   : > { %s38_s29 = ssub.s32 %s648_s22, %s891_s26  ;;  %p742_p3 = por %p50_p2, %p49_p1 }
   0xf   : > { %p35_p4 = scmp.ge.s32.totalorder %s893_s27, 2  ;;  %p55_p5 = scmp.ne.s32.totalorder %s632_s18, %s628_s17 }
  0x10   : > { %p56_p6 = scmp.eq.s32.totalorder %s428_s0, 0  ;;  %p130_p7 = scmp.eq.s32.totalorder %s428_s0, 3 }
  0x11   : > { %s895_s27 = smov (%p35_p4, %s893_s27), 0  ;;  %p136_p10 = scmp.eq.s32.totalorder %s429_s25, 3 }
  0x12   : > { %876 = sst [smem:[#allocation10_spill]] %s895_s27  ;;  %p750_p8 = por %p56_p6, %p55_p5 }
  0x13   : > { %p754_p9 = por %p130_p7, %p49_p1  ;;  %s37_s7 = ssub.s32 %s652_s23, %s895_s27 }
  0x14   : > { %s39_s8 = sor.u32 %s38_s29, %s37_s7  ;;  %p760_p12 = por %p136_p10, %p55_p5 }
  0x15   : > { %p40_p11 = scmp.eq.s32.totalorder %s39_s8, 0  ;;  %p458_p13 = scmp.lt.s32.totalorder %s656_s24, 4 }
  0x16   : > { %s879_s9 = scalar_select %p760_p12, 1, 0 }
  0x17   : > { %s159_s10 = sand.u32 1, %s636_s19   ;;  %s433_s13 = sshll.u32 %s652_s23, 1 }
  0x18   : > { %s767_s11 = scalar_select %p40_p11, %s636_s19, %s42_s28  }
  0x19   : > { %s432_s12 = sshll.u32 %s159_s10, 2  ;;  %s168_s14 = sadd.s32 %s648_s22, %s433_s13 }
  0x1a   : > { %s163_s15 = scalar_lea.vmem [#allocation4], %s432_s12  ;;  %s434_s0 = sshll.u32 %s168_s14, 6 }
  0x1b   : > { %s172_s16 = sshll.u32 %s163_s15, 4  ;;  %s170_s29 = scalar_lea.hbm %s870_s1, %s434_s0  ;;  %s173_s16 = int_to_ptr.vmem [resolvable:$true] %s172_s16 }
  0x1c   : > { %p776_p0 = pnand %p458_p13, %p742_p3  ;;  %p435_p1 = scmp.ge.s32.totalorder %s656_s24, 1 }
  0x1d   : > { %p187_p2 = scmp.lt.s32.totalorder %s656_s24, 5  ;;  %s160_s28 = scalar_lea.sflag [#allocation5], %s159_s10 }
  0x1e   : > { %p534_p4 = pneg %p776_p0  ;;  %s545_s8 = scalar_lea.vmem %s173_s16, 64 }
  0x1f   : > { %p546_p5 = scmp.ne.s32.totalorder %s173_s16, %s545_s8  ;;  %s658_s12 = smov [#allocation4]  }
  0x20   : > { %s550_s13 = sshll.u32 %s658_s12, 4  ;;  %s551_s13 = int_to_ptr.vmem [resolvable:$false] %s550_s13 }
  0x21   : > { %p548_p6 = pnand %p546_p5, %p534_p4  ;;  %s552_s27 = scalar_lea.vmem %s551_s13, 128 }
  0x22   : > { %p553_p10 = scmp.lt.s32.totalorder %s173_s16, %s551_s13  ;;  %p554_p11 = scmp.lt.s32.totalorder %s552_s27, %s545_s8 }
  0x23   : > { %p549_p7 = pneg %p548_p6 }
  0x24   : > { %p555_p3 = por %p554_p11, %p553_p10 }
  0x26   : > { %p556_p13 = pnand %p555_p3, %p549_p7 }
  0x28   : > { %559 = shalt.err (!%p556_p13)
}
  0x29   : > { %453 = dma.hbm_to_vmem [thread:$0]  (!%p776_p0), %s170_s29, 64, %s173_s16, %s160_s28  }
  0x2a   : > { %p188_p12 = pnand %p435_p1, %p187_p2 }
  0x2b   : > { %s791_s30 = sand.u32 (!%p188_p12), 1, %s632_s18  }
  0x2c   : > { %191 = sbr.rel (%p188_p12) target bundleno = 411 (0x19b), region = 32  ;;  %s436_s10 = sshll.u32 (!%p188_p12), %s791_s30, 2 }
  0x2d   : > { %s194_s14 = scalar_lea.sflag (!%p188_p12), [#allocation5], %s791_s30  ;;  %s197_s15 = scalar_lea.vmem (!%p188_p12), [#allocation4], %s436_s10 }
  0x31   : > { %619 = dma.done.wait (%p750_p8), %s194_s14, 64  }
  0x32   : > { %621 = vsyncadd (%p750_p8), %s194_s14, 4294967232  ;;  %v659_v0 = vmov 0   ;;  %v235_v1 = vld [vmem:[%s872_s3] sm:$0xf]  ;;  %vm236_vm0 = vcmask 1043456   ;;  %p226_p8 = scmp.lt.s32.totalorder %s644_s21, 1  ;;  %v256_v15 = vlaneseq }
  0x33   : > { %525 = vset.pattern.permute.xlu0 %v659_v0  ;;  %v233_v2 = vld [vmem:[%s197_s15] sm:$0xf]  ;;  %p228_p12 = scmp.lt.s32.totalorder %s640_s20, 1  ;;  %s298_s13 = sld [smem:[#allocation3]]  ;;  %vm302_vm3 = vcmask 1040384  }
  0x34   : > { %276 = vperm.xlu0 %525, %v235_v1   ;;  %v237_v3 = vsel %vm236_vm0, %v233_v2, -inf  ;;  %s227_s5 = scalar_select %p226_p8, %s644_s21, 1  ;;  %v257_v17 = vshrl.u32 %v256_v15, 7  ;;  %v295_v44 = vand.u32 127, %v256_v15 }
  0x35   : > { %v238_v4 = vrot.slane %v237_v3, 4  ;;  %s229_s25 = scalar_select %p228_p12, %s640_s20, 1 }
  0x36   : > { %s437_s29 = sshll.u32 %s227_s5, 1  ;;  %s439_s27 = sshll.u32 %s640_s20, 7  ;;  %vm313_vm4 = vcmp.eq.s32.totalorder %v295_v44, 0 }
  0x37   : > { %v239_v5 = vmax.f32 %v237_v3, %v238_v4  ;;  %s231_s7 = sadd.s32 %s437_s29, %s229_s25  ;;  %v296_v47 = vstv %s439_s27  ;;  %s440_s10 = sshll.u32 %s644_s21, 1 }
  0x38   : > { %s232_s12 = scalar_lea.vmem %s871_s2, %s231_s7  ;;  %v297_v49 = vadd.s32 %v296_v47, %v295_v44  ;;  %s328_s14 = sadd.s32 %s640_s20, %s440_s10 }
  0x39   : > { %v240_v6 = vrot.slane %v239_v5, 2  ;;  %v438_v18 = vld [vmem:[%s232_s12] ss:$0 sm:$0xff]  ;;  %v299_v52 = vstv %s298_s13  ;;  %s441_s15 = sshll.u32 %s328_s14, 4  ;;  %s225_s16 = scalar_lea.vmem [#allocation7], %s791_s30 }
  0x3a   : > { %vm262_vm1 = vcmp.eq.s32.totalorder %v257_v17, %v438_v18  ;;  %vm300_vm2 = vcmp.lt.s32.totalorder %v297_v49, %v299_v52  ;;  %s332_s0 = sshll.u32 %s225_s16, 4  ;;  %s822_s7 = scalar_lea.hbm %s873_s4, %s441_s15  ;;  %s333_s0 = int_to_ptr.vmem [resolvable:$true] %s332_s0 }
  0x3b   : > { %v241_v7 = vmax.f32 %v239_v5, %v240_v6  ;;  %s318_s28 = scalar_lea.sflag [#allocation6], %s791_s30  ;;  %s560_s8 = scalar_lea.vmem %s333_s0, 16 }
  0x3c   : > { %p561_p0 = scmp.ne.s32.totalorder %s333_s0, %s560_s8  ;;  %s660_s20 = smov [#allocation7]  }
  0x3d   : > { %v242_v8 = vrot.slane %v241_v7, 1  ;;  %s564_s21 = sshll.u32 %s660_s20, 4  ;;  %s565_s21 = int_to_ptr.vmem [resolvable:$false] %s564_s21 }
  0x3e   : > { %p562_p1 = pnand %p561_p0, %p754_p9  ;;  %s566_s12 = scalar_lea.vmem %s565_s21, 32 }
  0x3f   : > { %v243_v9 = vmax.f32 %v241_v7, %v242_v8  ;;  %p567_p4 = scmp.lt.s32.totalorder %s333_s0, %s565_s21  ;;  %p568_p5 = scmp.lt.s32.totalorder %s566_s12, %s560_s8 }
  0x40   : > { %p563_p2 = pneg %p562_p1 }
  0x41   : > { %v244_v10 = vsub.f32 %v233_v2, %v243_v9  ;;  %p569_p6 = por %p568_p5, %p567_p4 }
  0x43   : > { %v245_v11 = vmul.f32 1.442695, %v244_v10  ;;  %v263_v21 = vsel %vm262_vm1, %v244_v10, 0.0  ;;  %p570_p7 = pnand %p569_p6, %p563_p2 }
  0x44   : > { %v264_v23 = vsel %vm236_vm0, %v263_v21, 0.0 }
  0x45   : > { %526 = vpow2.f32 %v245_v11  ;;  %v265_v24 = vrot.slane %v264_v23, 4 }
  0x47   : > { %v266_v26 = vadd.f32 %v265_v24, %v264_v23 }
  0x49   : > { %v267_v27 = vrot.slane %v266_v26, 2 }
  0x4b   : > { %v268_v28 = vadd.f32 %v267_v27, %v266_v26 }
  0x4d   : > { %v269_v29 = vrot.slane %v268_v28, 1 }
  0x4f   : > { %v270_v31 = vadd.f32 %v269_v29, %v268_v28 }
  0x52   : > { %v527_v12 = vpop.eup %526 }
  0x53   : > { %v247_v13 = vsel %vm236_vm0, %v527_v12, 0.0 }
  0x54   : > { %v248_v14 = vrot.slane %v247_v13, 4 }
  0x56   : > { %v249_v16 = vadd.f32 %v248_v14, %v247_v13 }
  0x58   : > { %v250_v19 = vrot.slane %v249_v16, 2 }
  0x5a   : > { %v251_v20 = vadd.f32 %v250_v19, %v249_v16 }
  0x5c   : > { %v252_v22 = vrot.slane %v251_v20, 1 }
  0x5e   : > { %v253_v25 = vadd.f32 %v252_v22, %v251_v20 }
  0x60   : > { %528 = vlog2.f32 %v253_v25 }
  0x6d   : > { %v529_v30 = vpop.eup %528 }
  0x6e   : > { %v255_v32 = vmul.f32 0.6931472, %v529_v30 }
  0x70   : > { %v271_v33 = vsub.f32 %v270_v31, %v255_v32 }
  0x72   : > { %v272_v34 = vmul.f32 1.442695, %v271_v33 }
  0x74   : > { %530 = vpow2.f32 %v272_v34 }
  0x81   : > { %v531_v35 = vpop.eup %530 }
  0x82   : > { %v288_v38 = vsub.f32 1.0, %v531_v35 }
  0x84   : > { %v289_v42 = vmax.f32 %v288_v38, 0.0 }
  0x86   : > { %v290_v46 = vmul.f32 %v289_v42, %v289_v42 }
  0x88   : > { %v291_v51 = vsub.f32 0.0, %v290_v46 }
  0xaf   : > { %v277_v36 = vpop.permute.xlu0 %276 }
  0xb0   : > { %v279_v37 = vsel %vm262_vm1, %v277_v36, 0.0 }
  0xb1   : > { %v280_v39 = vsel %vm236_vm0, %v279_v37, 0.0 }
  0xb2   : > { %v281_v40 = vrot.slane %v280_v39, 4 }
  0xb4   : > { %v282_v41 = vadd.f32 %v281_v40, %v280_v39 }
  0xb6   : > { %v283_v43 = vrot.slane %v282_v41, 2 }
  0xb8   : > { %v284_v45 = vadd.f32 %v283_v43, %v282_v41 }
  0xba   : > { %v285_v48 = vrot.slane %v284_v45, 1 }
  0xbc   : > { %v286_v50 = vadd.f32 %v285_v48, %v284_v45 }
  0xbe   : > { %v287_v53 = vmul.f32 %v286_v50, %v271_v33 }
  0xc0   : > { %v292_v54 = vmul.f32 %v291_v51, %v287_v53 }
  0xc2   : > { %v301_v55 = vsel %vm300_vm2, %v292_v54, 0.0 }
  0xc3   : > { %v303_v56 = vsel %vm302_vm3, %v301_v55, 0.0 }
  0xc4   : > { %304 = vadd.xlane.f32.xlu0 %v303_v56 }
 0x14d   : > { %v305_v57 = vpop.xlane.xlu0 %304 }
 0x14e   : > { %v306_v58 = vrot.slane %v305_v57, 4 }
 0x150   : > { %v307_v59 = vadd.f32 %v306_v58, %v305_v57 }
 0x152   : > { %v308_v60 = vrot.slane %v307_v59, 2 }
 0x154   : > { %v309_v61 = vadd.f32 %v308_v60, %v307_v59 }
 0x156   : > { %v310_v62 = vrot.slane %v309_v61, 1 }
 0x158   : > { %v311_v63 = vadd.f32 %v310_v62, %v309_v61 }
 0x15a   : > { %444 = vpush %v311_v63 }
 0x18b   : > { %s445_s5 = spop %444 }
 0x18c   : > { %v314_v0 = vstv %s445_s5 }
 0x18d   : > { %v315_v1 = vsel %vm313_vm4, %v314_v0, 0.0 }
 0x18e   : > { %316 = vst [vmem:[%s225_s16] sm:$0x1] %v315_v1 }
 0x18f   : > { %573 = shalt.err (!%p570_p7)
}
 0x190   : > { %s574_s13 = scalar_lea.hbm %s822_s7, 16  ;;  %s578_s10 = scalar_lea.hbm %s873_s4, 64 }
 0x191   : > { %p575_p10 = scmp.ne.s32.totalorder %s822_s7, %s574_s13  ;;  %p579_p13 = scmp.lt.s32.totalorder %s822_s7, %s873_s4 }
 0x192   : > { %p580_p8 = scmp.lt.s32.totalorder %s578_s10, %s574_s13 }
 0x193   : > { %p576_p11 = pnand %p575_p10, %p754_p9 }
 0x194   : > { %p581_p12 = por %p580_p8, %p579_p13 }
 0x195   : > { %p577_p3 = pneg %p576_p11 }
 0x197   : > { %p582_p0 = pnand %p581_p12, %p577_p3 }
 0x199   : > { %585 = shalt.err (!%p582_p0)
}
 0x19a   : > { %448 = dma.vmem_to_hbm [thread:$0]  (%p754_p9), %s333_s0, 16, %s822_s7, %s318_s28  }
 0x19b PF: > { %p459_p1 = scmp.ge.s32.totalorder %s656_s24, 2  ;;  %s344_s16 = sand.u32 1, %s628_s17  }
 0x19c   : > { %p881_p2 = scmp.ne.s32.totalorder %s879_s9, 0  ;;  %s345_s5 = scalar_lea.sflag [#allocation6], %s344_s16 }
 0x19e   : > { %p455_p4 = pnand %p459_p1, %p881_p2 }
 0x1a0   : > { %p456_p5 = pneg %p455_p4 }
 0x1a2   : > { %623 = dma.done.wait (%p456_p5), %s345_s5, 16  }
 0x1a3   : > { %625 = vsyncadd (%p456_p5), %s345_s5, 4294967280  ;;  %s21_s24 = sadd.s32 1, %s656_s24   ;;  %s882_s6 = sld [smem:[#allocation10_spill]] }
 0x1a4   : > { %p18_p6 = scmp.ge.s32.totalorder %s21_s24, 6   ;;  %s883_s17 = smov %s632_s18 }
 0x1a5   : > { %s884_s18 = smov %s636_s19  ;;  %s885_s19 = smov %s767_s11 }
 0x1a6   : > { %s886_s20 = smov %s648_s22  ;;  %s887_s21 = smov %s652_s23 }
 0x1a7   : > { %s888_s22 = smov %s891_s26  ;;  %20 = sbr.rel (!%p18_p6) target bundleno = 9 (0x9), region = 80 }
 0x1a9   : > { %s889_s23 = smov %s882_s6 }
 0x1ac   :  { %349 = vsyncpa [#allocation5], 1 }
 0x1ad   :  { %351 = vsyncpa [#allocation5 + $0x1], 1 }
 0x1ae   :  { %352 = vsyncpa [#allocation6], 1 }
 0x1af   :  { %354 = vsyncpa [#allocation6 + $0x1], 1 }

</bundles_post_ra>
